<compile_context>
chip_gen: v6e
topology: v6e:2x2x1
jax: 0.10.0
libtpu: 0.0.40
codegen_flags: <defaults>
</compile_context>

<pallas_src>
from functools import partial

import jax
import jax.numpy as jnp
from jax.experimental import pallas as pl
from jax.experimental.pallas import tpu as pltpu


def _round_up(x, m):
    return (x + m - 1) // m * m


# --------------------------------------------------------------------------
# Pass 1: conv (bf16 MXU, in-kernel im2col) + per-channel sum / sum-of-squares
# --------------------------------------------------------------------------
def _conv_stats_kernel(w_ref, x_ref, stat_ref, *, num_k, c_in_p, l_out_p, l_out):
    w = w_ref[...]                     # (C_out_p, K*C_in_p) bf16, resident
    x = x_ref[...]                     # (C_in_p, L_buf)     bf16, this batch

    # Conv1d as K accumulated matmuls over lane-shifted views (in-kernel im2col).
    y = jnp.zeros((w.shape[0], l_out_p), jnp.float32)
    for k in range(num_k):             # K is small & static -> unrolled
        y += jnp.dot(w[:, k * c_in_p:(k + 1) * c_in_p],
                     x[:, k:k + l_out_p],
                     preferred_element_type=jnp.float32)

    # Mask lane-padding columns so they do not pollute the batch statistics.
    lane = jax.lax.broadcasted_iota(jnp.int32, y.shape, 1)
    y = jnp.where(lane < l_out, y, 0.0)

    s = jnp.sum(y, axis=1, keepdims=True)        # (C_out_p, 1)
    q = jnp.sum(y * y, axis=1, keepdims=True)    # (C_out_p, 1)
    stat_ref[...] = jnp.concatenate([s, q], axis=1)


# --------------------------------------------------------------------------
# Pass 2: conv (bf16 MXU) -> BN scale/shift (f32) -> ReLU -> AvgPool1d(2)
# --------------------------------------------------------------------------
def _conv_bn_relu_pool_kernel(w_ref, x_ref, scale_ref, shift_ref, pool_ref, out_ref,
                              *, num_k, c_in_p, l_out_p):
    w = w_ref[...]
    x = x_ref[...]

    y = jnp.zeros((w.shape[0], l_out_p), jnp.float32)
    for k in range(num_k):
        y += jnp.dot(w[:, k * c_in_p:(k + 1) * c_in_p],
                     x[:, k:k + l_out_p],
                     preferred_element_type=jnp.float32)

    # BatchNorm (training-mode, precomputed scale/shift) + ReLU, all in f32.
    y = jnp.maximum(y * scale_ref[...] + shift_ref[...], 0.0)

    # AvgPool1d(2) via a shared per-batch (L_out_p, L_pool_p) 0.5-matrix.
    out_ref[...] = jnp.dot(y, pool_ref[...], preferred_element_type=jnp.float32)


def conv_block(x, weight, bias, gamma, beta, *, padding, eps=1e-3):
    # Conv bias is exactly cancelled by training-mode BatchNorm mean subtraction.
    del bias
    N, C_in, L = x.shape
    C_out, _, K = weight.shape
    L_out = L + 2 * padding - K + 1
    L_pool = L_out // 2

    # Padded / lane-aligned sizes.
    C_in_p = _round_up(C_in, 8)
    C_out_p = _round_up(C_out, 8)
    L_out_p = _round_up(L_out, 256)          # lane-dense conv tile
    L_pool_p = L_out_p // 2                  # multiple of 128 -> unmasked stores
    L_buf = _round_up(L_out_p + K - 1, 128)  # holds conv zero-pad + shift slack
    CK = C_in_p * K

    # ---- host-side layout prep (cheap, O(input)) ----
    x_buf = jnp.zeros((N, C_in_p, L_buf), jnp.bfloat16)
    x_buf = x_buf.at[:, :C_in, padding:padding + L].set(x.astype(jnp.bfloat16))

    # Weight as (C_out_p, K*C_in_p) with k-major columns to match the shifted slices.
    w_p = jnp.zeros((C_out_p, K, C_in_p), jnp.float32)
    w_p = w_p.at[:C_out, :, :C_in].set(jnp.transpose(weight, (0, 2, 1)).astype(jnp.float32))
    w_bf = w_p.reshape(C_out_p, CK).astype(jnp.bfloat16)

    gamma_p = jnp.zeros((C_out_p,), jnp.float32).at[:C_out].set(gamma)
    beta_p = jnp.zeros((C_out_p,), jnp.float32).at[:C_out].set(beta)

    # ---- pass 1: per-batch partial BN statistics ----
    stats = pl.pallas_call(
        partial(_conv_stats_kernel, num_k=K, c_in_p=C_in_p, l_out_p=L_out_p, l_out=L_out),
        out_shape=jax.ShapeDtypeStruct((N, C_out_p, 2), jnp.float32),
        grid=(N,),
        in_specs=[
            pl.BlockSpec((C_out_p, CK), lambda b: (0, 0)),          # weights (resident)
            pl.BlockSpec((None, C_in_p, L_buf), lambda b: (b, 0, 0)),
        ],
        out_specs=pl.BlockSpec((None, C_out_p, 2), lambda b: (b, 0, 0)),
        compiler_params=pltpu.CompilerParams(dimension_semantics=("parallel",)),
        cost_estimate=pl.CostEstimate(
            flops=2 * N * C_out_p * CK * L_out_p,
            transcendentals=0,
            bytes_accessed=x_buf.size * 2 + w_bf.size * 2 + N * C_out_p * 2 * 4),
    )(w_bf, x_buf)

    # ---- tiny glue: global batch stats -> per-channel scale/shift (training-mode BN)
    count = N * L_out
    ssum = jnp.sum(stats[:, :, 0], axis=0)
    ssq = jnp.sum(stats[:, :, 1], axis=0)
    mean = ssum / count
    var = jnp.maximum(ssq / count - mean * mean, 0.0)   # biased variance, as BN uses
    scale = gamma_p * jax.lax.rsqrt(var + eps)
    shift = beta_p - mean * scale

    # Shared per-batch pooling matrix: averages lane pairs (2j, 2j+1) -> j.
    r = jnp.arange(L_out_p)
    c = jnp.arange(L_pool_p)
    pool_mat = 0.5 * ((r[:, None] // 2) == c[None, :]).astype(jnp.float32)

    # ---- pass 2: fused conv + BN + ReLU + AvgPool, output already in NCL layout ----
    out_p = pl.pallas_call(
        partial(_conv_bn_relu_pool_kernel, num_k=K, c_in_p=C_in_p, l_out_p=L_out_p),
        out_shape=jax.ShapeDtypeStruct((N, C_out_p, L_pool_p), jnp.float32),
        grid=(N,),
        in_specs=[
            pl.BlockSpec((C_out_p, CK), lambda b: (0, 0)),
            pl.BlockSpec((None, C_in_p, L_buf), lambda b: (b, 0, 0)),
            pl.BlockSpec((C_out_p, 1), lambda b: (0, 0)),
            pl.BlockSpec((C_out_p, 1), lambda b: (0, 0)),
            pl.BlockSpec((L_out_p, L_pool_p), lambda b: (0, 0)),
        ],
        out_specs=pl.BlockSpec((None, C_out_p, L_pool_p), lambda b: (b, 0, 0)),
        compiler_params=pltpu.CompilerParams(dimension_semantics=("parallel",)),
        cost_estimate=pl.CostEstimate(
            flops=2 * N * C_out_p * L_out_p * (CK + L_pool_p),
            transcendentals=0,
            bytes_accessed=(x_buf.size * 2 + w_bf.size * 2 + pool_mat.size * 4
                            + N * C_out_p * L_pool_p * 4)),
    )(w_bf, x_buf, scale.reshape(C_out_p, 1), shift.reshape(C_out_p, 1), pool_mat)

    # Drop channel / length padding; layout is already (N, C_out, L_pool).
    return out_p[:, :C_out, :L_pool]


def conv_block_reference(x, weight, bias, gamma, beta, *, padding, eps=1e-3):
    """Pure-JAX f32 reference mirroring the PyTorch forward (training-mode BN)."""
    y = jax.lax.conv_general_dilated(
        x, weight, window_strides=(1,), padding=[(padding, padding)],
        dimension_numbers=("NCH", "OIH", "NCH"))
    y = y + bias[None, :, None]
    mean = y.mean(axis=(0, 2), keepdims=True)
    var = ((y - mean) ** 2).mean(axis=(0, 2), keepdims=True)
    y = (y - mean) / jnp.sqrt(var + eps)
    y = gamma[None, :, None] * y + beta[None, :, None]
    y = jnp.maximum(y, 0.0)
    N, C, L = y.shape
    return y[:, :, :(L // 2) * 2].reshape(N, C, L // 2, 2).mean(-1)


if __name__ == "__main__":
    # Small shapes consistent with the module: Conv1d expects (N, C_in, L).
    N, C_in, C_out, K, PAD, L = 2, 4, 8, 3, 1, 16
    BN_EPS = 1e-3

    key = jax.random.PRNGKey(0)
    kx, kw, kb, kg, kbeta = jax.random.split(key, 5)

    x = jax.random.normal(kx, (N, C_in, L), dtype=jnp.float32)
    weight = jax.random.normal(kw, (C_out, C_in, K), dtype=jnp.float32) * 0.3
    bias = jax.random.normal(kb, (C_out,), dtype=jnp.float32) * 0.1
    gamma = 1.0 + 0.1 * jax.random.normal(kg, (C_out,), dtype=jnp.float32)
    beta = 0.1 * jax.random.normal(kbeta, (C_out,), dtype=jnp.float32)

    fwd = jax.jit(partial(conv_block, padding=PAD, eps=BN_EPS))
    out = fwd(x, weight, bias, gamma, beta)
    out = jax.block_until_ready(out)

    ref = conv_block_reference(x, weight, bias, gamma, beta, padding=PAD, eps=BN_EPS)
    assert out.shape == (N, C_out, (L + 2 * PAD - K + 1) // 2), out.shape
    # bf16 MXU operands (f32 accumulation) loosen the tolerance vs the pure-f32 reference.
    err = float(jnp.max(jnp.abs(out - ref)))
    assert jnp.allclose(out, ref, rtol=5e-2, atol=5e-2), err

    print("KERNEL_OK")
</pallas_src>

<mosaic_0001>
module attributes {stable_mosaic.version = 11 : i64} {
  func.func @_conv_stats_kernel(%arg0: i32, %arg1: memref<8x24xbf16, #tpu.memory_space<vmem>>, %arg2: memref<1x8x384xbf16, #tpu.memory_space<vmem>>, %arg3: memref<1x8x2xf32, #tpu.memory_space<vmem>>) attributes {dimension_semantics = [#tpu.dimension_semantics<parallel>], iteration_bounds = array<i64: 2>, scalar_prefetch = 0 : i64, scratch_operands = 0 : i64, tpu.core_type = #tpu.core_type<tc>, window_params = [{pipeline_mode = #tpu.pipeline_mode<synchronous>, transform_indices = @transform_0, window_bounds = array<i64: 8, 24>}, {transform_indices = @transform_1, window_bounds = array<i64: 1, 8, 384>}, {transform_indices = @transform_2, window_bounds = array<i64: 1, 8, 2>}]} {
    %c0 = arith.constant 0 : index
    %c0_0 = arith.constant 0 : index
    %0 = vector.load %arg1[%c0, %c0_0] : memref<8x24xbf16, #tpu.memory_space<vmem>>, vector<8x24xbf16>
    %c0_1 = arith.constant 0 : index
    %c0_2 = arith.constant 0 : index
    %c0_3 = arith.constant 0 : index
    %1 = vector.load %arg2[%c0_1, %c0_2, %c0_3] : memref<1x8x384xbf16, #tpu.memory_space<vmem>>, vector<1x8x384xbf16>
    %2 = vector.shape_cast %1 : vector<1x8x384xbf16> to vector<8x384xbf16>
    %cst = arith.constant 0.000000e+00 : f32
    %3 = vector.broadcast %cst : f32 to vector<8x256xf32>
    %4 = vector.extract_strided_slice %0 {offsets = [0, 0], sizes = [8, 8], strides = [1, 1]} : vector<8x24xbf16> to vector<8x8xbf16>
    %5 = vector.extract_strided_slice %2 {offsets = [0, 0], sizes = [8, 256], strides = [1, 1]} : vector<8x384xbf16> to vector<8x256xbf16>
    %cst_4 = arith.constant dense<0.000000e+00> : vector<8x256xf32>
    %6 = tpu.matmul %4, %5, %cst_4 {dimension_numbers = #tpu.dot_dimension_numbers<[1], [0], [0], [1], [0, 0, 1, 1], [], []>} : vector<8x8xbf16>, vector<8x256xbf16>, vector<8x256xf32> -> vector<8x256xf32>
    %7 = arith.addf %3, %6 : vector<8x256xf32>
    %8 = vector.extract_strided_slice %0 {offsets = [0, 8], sizes = [8, 8], strides = [1, 1]} : vector<8x24xbf16> to vector<8x8xbf16>
    %9 = vector.extract_strided_slice %2 {offsets = [0, 1], sizes = [8, 256], strides = [1, 1]} : vector<8x384xbf16> to vector<8x256xbf16>
    %cst_5 = arith.constant dense<0.000000e+00> : vector<8x256xf32>
    %10 = tpu.matmul %8, %9, %cst_5 {dimension_numbers = #tpu.dot_dimension_numbers<[1], [0], [0], [1], [0, 0, 1, 1], [], []>} : vector<8x8xbf16>, vector<8x256xbf16>, vector<8x256xf32> -> vector<8x256xf32>
    %11 = arith.addf %7, %10 : vector<8x256xf32>
    %12 = vector.extract_strided_slice %0 {offsets = [0, 16], sizes = [8, 8], strides = [1, 1]} : vector<8x24xbf16> to vector<8x8xbf16>
    %13 = vector.extract_strided_slice %2 {offsets = [0, 2], sizes = [8, 256], strides = [1, 1]} : vector<8x384xbf16> to vector<8x256xbf16>
    %cst_6 = arith.constant dense<0.000000e+00> : vector<8x256xf32>
    %14 = tpu.matmul %12, %13, %cst_6 {dimension_numbers = #tpu.dot_dimension_numbers<[1], [0], [0], [1], [0, 0, 1, 1], [], []>} : vector<8x8xbf16>, vector<8x256xbf16>, vector<8x256xf32> -> vector<8x256xf32>
    %15 = arith.addf %11, %14 : vector<8x256xf32>
    %16 = tpu.iota {dimensions = array<i32: 1>} : vector<8x256xi32>
    %c16_i32 = arith.constant 16 : i32
    %17 = vector.broadcast %c16_i32 : i32 to vector<8x256xi32>
    %18 = arith.cmpi slt, %16, %17 : vector<8x256xi32>
    %cst_7 = arith.constant 0.000000e+00 : f32
    %19 = vector.broadcast %cst_7 : f32 to vector<8x256xf32>
    %20 = arith.select %18, %15, %19 : vector<8x256xi1>, vector<8x256xf32>
    %cst_8 = arith.constant dense<0.000000e+00> : vector<8xf32>
    %21 = vector.multi_reduction <add>, %20, %cst_8 [1] : vector<8x256xf32> to vector<8xf32>
    %22 = vector.shape_cast %21 : vector<8xf32> to vector<8x1xf32>
    %23 = arith.mulf %20, %20 : vector<8x256xf32>
    %cst_9 = arith.constant dense<0.000000e+00> : vector<8xf32>
    %24 = vector.multi_reduction <add>, %23, %cst_9 [1] : vector<8x256xf32> to vector<8xf32>
    %25 = vector.shape_cast %24 : vector<8xf32> to vector<8x1xf32>
    %26 = tpu.concatenate %22, %25 in 1 : vector<8x1xf32>, vector<8x1xf32> -> vector<8x2xf32>
    %c0_10 = arith.constant 0 : index
    %c0_11 = arith.constant 0 : index
    %c0_12 = arith.constant 0 : index
    %27 = vector.load %arg3[%c0_10, %c0_11, %c0_12] : memref<1x8x2xf32, #tpu.memory_space<vmem>>, vector<1x8x2xf32>
    %28 = vector.shape_cast %27 : vector<1x8x2xf32> to vector<8x2xf32>
    %29 = vector.shape_cast %26 : vector<8x2xf32> to vector<1x8x2xf32>
    tpu.vector_store %arg3[%c0_10, %c0_11, %c0_12], %29 {strides = array<i32>} : memref<1x8x2xf32, #tpu.memory_space<vmem>>, vector<1x8x2xf32>,
    return
  }
  func.func @transform_0(%arg0: i32) -> (i32, i32) {
    %c0_i32 = arith.constant 0 : i32
    %c0_i32_0 = arith.constant 0 : i32
    %c0_i32_1 = arith.constant 0 : i32
    return %c0_i32, %c0_i32_0 : i32, i32
  }
  func.func @transform_1(%arg0: i32) -> (i32, i32, i32) {
    %c0_i32 = arith.constant 0 : i32
    %c0_i32_0 = arith.constant 0 : i32
    %c0_i32_1 = arith.constant 0 : i32
    return %arg0, %c0_i32, %c0_i32_0 : i32, i32, i32
  }
  func.func @transform_2(%arg0: i32) -> (i32, i32, i32) {
    %c0_i32 = arith.constant 0 : i32
    %c0_i32_0 = arith.constant 0 : i32
    %c0_i32_1 = arith.constant 0 : i32
    return %arg0, %c0_i32, %c0_i32_0 : i32, i32, i32
  }
}

module attributes {stable_mosaic.version = 11 : i64} {
  func.func @_conv_bn_relu_pool_kernel(%arg0: i32, %arg1: memref<8x24xbf16, #tpu.memory_space<vmem>>, %arg2: memref<1x8x384xbf16, #tpu.memory_space<vmem>>, %arg3: memref<8x1xf32, #tpu.memory_space<vmem>>, %arg4: memref<8x1xf32, #tpu.memory_space<vmem>>, %arg5: memref<256x128xf32, #tpu.memory_space<vmem>>, %arg6: memref<1x8x128xf32, #tpu.memory_space<vmem>>) attributes {dimension_semantics = [#tpu.dimension_semantics<parallel>], iteration_bounds = array<i64: 2>, scalar_prefetch = 0 : i64, scratch_operands = 0 : i64, tpu.core_type = #tpu.core_type<tc>, window_params = [{pipeline_mode = #tpu.pipeline_mode<synchronous>, transform_indices = @transform_0, window_bounds = array<i64: 8, 24>}, {transform_indices = @transform_1, window_bounds = array<i64: 1, 8, 384>}, {pipeline_mode = #tpu.pipeline_mode<synchronous>, transform_indices = @transform_2, window_bounds = array<i64: 8, 1>}, {pipeline_mode = #tpu.pipeline_mode<synchronous>, transform_indices = @transform_3, window_bounds = array<i64: 8, 1>}, {pipeline_mode = #tpu.pipeline_mode<synchronous>, transform_indices = @transform_4, window_bounds = array<i64: 256, 128>}, {transform_indices = @transform_5, window_bounds = array<i64: 1, 8, 128>}]} {
    %c0 = arith.constant 0 : index
    %c0_0 = arith.constant 0 : index
    %0 = vector.load %arg1[%c0, %c0_0] : memref<8x24xbf16, #tpu.memory_space<vmem>>, vector<8x24xbf16>
    %c0_1 = arith.constant 0 : index
    %c0_2 = arith.constant 0 : index
    %c0_3 = arith.constant 0 : index
    %1 = vector.load %arg2[%c0_1, %c0_2, %c0_3] : memref<1x8x384xbf16, #tpu.memory_space<vmem>>, vector<1x8x384xbf16>
    %2 = vector.shape_cast %1 : vector<1x8x384xbf16> to vector<8x384xbf16>
    %cst = arith.constant 0.000000e+00 : f32
    %3 = vector.broadcast %cst : f32 to vector<8x256xf32>
    %4 = vector.extract_strided_slice %0 {offsets = [0, 0], sizes = [8, 8], strides = [1, 1]} : vector<8x24xbf16> to vector<8x8xbf16>
    %5 = vector.extract_strided_slice %2 {offsets = [0, 0], sizes = [8, 256], strides = [1, 1]} : vector<8x384xbf16> to vector<8x256xbf16>
    %cst_4 = arith.constant dense<0.000000e+00> : vector<8x256xf32>
    %6 = tpu.matmul %4, %5, %cst_4 {dimension_numbers = #tpu.dot_dimension_numbers<[1], [0], [0], [1], [0, 0, 1, 1], [], []>} : vector<8x8xbf16>, vector<8x256xbf16>, vector<8x256xf32> -> vector<8x256xf32>
    %7 = arith.addf %3, %6 : vector<8x256xf32>
    %8 = vector.extract_strided_slice %0 {offsets = [0, 8], sizes = [8, 8], strides = [1, 1]} : vector<8x24xbf16> to vector<8x8xbf16>
    %9 = vector.extract_strided_slice %2 {offsets = [0, 1], sizes = [8, 256], strides = [1, 1]} : vector<8x384xbf16> to vector<8x256xbf16>
    %cst_5 = arith.constant dense<0.000000e+00> : vector<8x256xf32>
    %10 = tpu.matmul %8, %9, %cst_5 {dimension_numbers = #tpu.dot_dimension_numbers<[1], [0], [0], [1], [0, 0, 1, 1], [], []>} : vector<8x8xbf16>, vector<8x256xbf16>, vector<8x256xf32> -> vector<8x256xf32>
    %11 = arith.addf %7, %10 : vector<8x256xf32>
    %12 = vector.extract_strided_slice %0 {offsets = [0, 16], sizes = [8, 8], strides = [1, 1]} : vector<8x24xbf16> to vector<8x8xbf16>
    %13 = vector.extract_strided_slice %2 {offsets = [0, 2], sizes = [8, 256], strides = [1, 1]} : vector<8x384xbf16> to vector<8x256xbf16>
    %cst_6 = arith.constant dense<0.000000e+00> : vector<8x256xf32>
    %14 = tpu.matmul %12, %13, %cst_6 {dimension_numbers = #tpu.dot_dimension_numbers<[1], [0], [0], [1], [0, 0, 1, 1], [], []>} : vector<8x8xbf16>, vector<8x256xbf16>, vector<8x256xf32> -> vector<8x256xf32>
    %15 = arith.addf %11, %14 : vector<8x256xf32>
    %c0_7 = arith.constant 0 : index
    %c0_8 = arith.constant 0 : index
    %16 = vector.load %arg3[%c0_7, %c0_8] : memref<8x1xf32, #tpu.memory_space<vmem>>, vector<8x1xf32>
    %17 = vector.broadcast %16 : vector<8x1xf32> to vector<8x256xf32>
    %18 = arith.mulf %15, %17 : vector<8x256xf32>
    %c0_9 = arith.constant 0 : index
    %c0_10 = arith.constant 0 : index
    %19 = vector.load %arg4[%c0_9, %c0_10] : memref<8x1xf32, #tpu.memory_space<vmem>>, vector<8x1xf32>
    %20 = vector.broadcast %19 : vector<8x1xf32> to vector<8x256xf32>
    %21 = arith.addf %18, %20 : vector<8x256xf32>
    %cst_11 = arith.constant 0.000000e+00 : f32
    %22 = vector.broadcast %cst_11 : f32 to vector<8x256xf32>
    %23 = arith.maximumf %21, %22 : vector<8x256xf32>
    %c0_12 = arith.constant 0 : index
    %c0_13 = arith.constant 0 : index
    %24 = vector.load %arg5[%c0_12, %c0_13] : memref<256x128xf32, #tpu.memory_space<vmem>>, vector<256x128xf32>
    %cst_14 = arith.constant dense<0.000000e+00> : vector<8x128xf32>
    %25 = tpu.matmul %23, %24, %cst_14 {dimension_numbers = #tpu.dot_dimension_numbers<[1], [0], [0], [1], [0, 0, 1, 1], [], []>} : vector<8x256xf32>, vector<256x128xf32>, vector<8x128xf32> -> vector<8x128xf32>
    %c0_15 = arith.constant 0 : index
    %c0_16 = arith.constant 0 : index
    %c0_17 = arith.constant 0 : index
    %26 = vector.load %arg6[%c0_15, %c0_16, %c0_17] : memref<1x8x128xf32, #tpu.memory_space<vmem>>, vector<1x8x128xf32>
    %27 = vector.shape_cast %26 : vector<1x8x128xf32> to vector<8x128xf32>
    %28 = vector.shape_cast %25 : vector<8x128xf32> to vector<1x8x128xf32>
    tpu.vector_store %arg6[%c0_15, %c0_16, %c0_17], %28 {strides = array<i32>} : memref<1x8x128xf32, #tpu.memory_space<vmem>>, vector<1x8x128xf32>,
    return
  }
  func.func @transform_0(%arg0: i32) -> (i32, i32) {
    %c0_i32 = arith.constant 0 : i32
    %c0_i32_0 = arith.constant 0 : i32
    %c0_i32_1 = arith.constant 0 : i32
    return %c0_i32, %c0_i32_0 : i32, i32
  }
  func.func @transform_1(%arg0: i32) -> (i32, i32, i32) {
    %c0_i32 = arith.constant 0 : i32
    %c0_i32_0 = arith.constant 0 : i32
    %c0_i32_1 = arith.constant 0 : i32
    return %arg0, %c0_i32, %c0_i32_0 : i32, i32, i32
  }
  func.func @transform_2(%arg0: i32) -> (i32, i32) {
    %c0_i32 = arith.constant 0 : i32
    %c0_i32_0 = arith.constant 0 : i32
    %c0_i32_1 = arith.constant 0 : i32
    return %c0_i32, %c0_i32_0 : i32, i32
  }
  func.func @transform_3(%arg0: i32) -> (i32, i32) {
    %c0_i32 = arith.constant 0 : i32
    %c0_i32_0 = arith.constant 0 : i32
    %c0_i32_1 = arith.constant 0 : i32
    return %c0_i32, %c0_i32_0 : i32, i32
  }
  func.func @transform_4(%arg0: i32) -> (i32, i32) {
    %c0_i32 = arith.constant 0 : i32
    %c0_i32_0 = arith.constant 0 : i32
    %c0_i32_1 = arith.constant 0 : i32
    return %c0_i32, %c0_i32_0 : i32, i32
  }
  func.func @transform_5(%arg0: i32) -> (i32, i32, i32) {
    %c0_i32 = arith.constant 0 : i32
    %c0_i32_0 = arith.constant 0 : i32
    %c0_i32_1 = arith.constant 0 : i32
    return %arg0, %c0_i32, %c0_i32_0 : i32, i32, i32
  }
}

</mosaic_0001>

<bundles_post_ra>
// kernel: conv_block.2
= control target key start
LH: loop header
LB: loop body
LE: loop exit
PB: predicated region body
PF: predicated region fallthrough
CT: control target
= control target key end

     0   :  { %s470_s9 = smov 0   ;;  %s503_s0 = inlined_call_operand.vmem [shape: bf16[8,24], index: 0, kind: input, shape index: {}]   ;;  %s504_s1 = inlined_call_operand.vmem [shape: bf16[2,8,384], index: 1, kind: input, shape index: {}]   ;;  %s505_s2 = inlined_call_operand.vmem [shape: f32[2,8,2], index: 2, kind: output, shape index: {}]  }
   0x1 LB: > { %s405_s10 = sadd.s32 4294967295, %s448_s9   ;;  %p409_p0 = scmp.ge.s32.totalorder %s448_s9, 1  ;;  %s448_s9 = sphi %s470_s9, %s12_s9  }
   0x2   : > { %p112_p1 = scmp.lt.s32.totalorder %s448_s9, 3 }
   0x4   : > { %p113_p2 = pnand %p409_p0, %p112_p1 }
   0x5   : > { %p133_p3 = scmp.lt.s32.totalorder (!%p113_p2), %s405_s10, 1  ;;  %s451_s17 = smov (!%p113_p2), 127  }
   0x6   : > { %116 = sbr.rel (%p113_p2) target bundleno = 488 (0x1e8), region = 28  ;;  %s452_s18 = smov (!%p113_p2), 120  }
   0x7   : > { %s453_s19 = smov (!%p113_p2), 126   ;;  %s454_s20 = smov (!%p113_p2), 112  }
   0xb   : > { %s507_s10 = smov (!%p133_p3, %s405_s10), 1  ;;  %v450_v0 = vmov 0   ;;  %v143_v1 = vld [vmem:[%s503_s0] sm:$0xf]  ;;  %vm172_vm0 = vcmask 1043456   ;;  %vm168_vm1 = vcmask 64512   ;;  %v333_v27 = vlaneseq }
   0xc   : > { %s424_s11 = smul.u32 12, %s507_s10  ;;  %211 = vmatprep.mubr.bf16.mxu0 %v450_v0  ;;  %261 = vmatprep.mubr.bf16.mxu1 %v450_v0  ;;  %v412_v6 = vcombine.low %v143_v1, %v143_v1  ;;  %vm165_vm2 = vcmask 1039360   ;;  %vm278_vm3 = vcmask 1031168   ;;  %s411_s21 = sshll.u32 %s507_s10, 3  ;;  %vm348_vm5 = vcmask 7168  }
   0xd   : > { %v334_v30 = vand.u32 127, %v333_v27  ;;  %s141_s24 = scalar_lea.vmem %s505_s2, %s411_s21  ;;  %vm350_vm6 = vcmask 15360  }
   0xe   : > { %s137_s14 = scalar_lea.vmem %s504_s1, %s424_s11 }
   0xf   : > { %v438_v2 = vld [vmem:[%s137_s14 + $0x8] ss:$0 sps:$4 sm:$0xff]   ;;  %v144_v3 = vld [vmem:[%s137_s14] sm:$0xff]  ;;  %vm336_vm4 = vcmp.lt.s32.totalorder %v334_v30, 16 }
  0x10   : > { %v413_v4 = vcombine.low %v144_v3, %v144_v3  ;;  %v414_v5 = vcombine.high %v144_v3, %v144_v3  ;;  %163 = vrot.lane.b32.xlu1 %v438_v2, %s451_s17 }
  0x12   : > { %159 = vrot.lane.b32.xlu0 %v413_v4, %s451_s17  ;;  %418 = vmatprep.subr.msk.bf16.mxu1 %vm172_vm0, %v414_v5  ;;  %v224_v7 = vsel %vm172_vm0, %v413_v4, 0 }
  0x13   : > { %244 = vmatpush1.bf16.msra.mxu1 %v224_v7 }
  0x14   : > { %149 = vrot.lane.b32.xlu1 %v412_v6, %s452_s18 }
  0x16   : > { %161 = vrot.lane.b32.xlu0 %v414_v5, %s451_s17  ;;  %419 = vmatmul.mubr.msk.bf16.vlgmr.msra.gmra.mxu1 %vm168_vm1, %v143_v1 }
  0x18   : > { %274 = vrot.lane.b32.xlu1 %v414_v5, %s453_s19 }
  0x1a   : > { %272 = vrot.lane.b32.xlu0 %v413_v4, %s453_s19 }
  0x1c   : > { %270 = vrot.lane.b32.xlu1 %v412_v6, %s454_s20 }
  0x1e   : > { %276 = vrot.lane.b32.xlu0 %v438_v2, %s453_s19 }
  0x82   : > { %v164_v8 = vpop.permute.xlu1 %163 }
  0x84   : > { %v160_v9 = vpop.permute.xlu0 %159 }
  0x86   : > { %v150_v10 = vpop.permute.xlu1 %149 }
  0x88   : > { %v162_v11 = vpop.permute.xlu0 %161 }
  0x89   : > { %v167_v12 = vsel %vm165_vm2, %v162_v11, %v164_v8  ;;  %v166_v13 = vsel %vm165_vm2, %v160_v9, %v162_v11 }
  0x8a   : > { %416 = vmatprep.subr.msk.bf16.mxu0 %vm172_vm0, %v167_v12  ;;  %v174_v14 = vsel %vm172_vm0, %v166_v13, 0  ;;  %v275_v15 = vpop.permute.xlu1 %274 }
  0x8b   : > { %194 = vmatpush1.bf16.msra.mxu0 %v174_v14 }
  0x8c   : > { %v273_v16 = vpop.permute.xlu0 %272 }
  0x8d   : > { %v279_v17 = vsel %vm278_vm3, %v273_v16, %v275_v15 }
  0x8e   : > { %417 = vmatmul.mubr.msk.bf16.vlgmr.msra.gmra.mxu0 %vm168_vm1, %v150_v10  ;;  %v285_v20 = vsel %vm172_vm0, %v279_v17, 0  ;;  %v271_v21 = vpop.permute.xlu1 %270 }
  0x8f   : > { %322 = vmatprep.mubr.bf16.mxu0 %v450_v0 }
  0x90   : > { %v277_v18 = vpop.permute.xlu0 %276 }
  0x91   : > { %v280_v19 = vsel %vm278_vm3, %v275_v15, %v277_v18 }
  0x92   : > { %420 = vmatprep.subr.msk.bf16.mxu0 %vm172_vm0, %v280_v19 }
  0x93   : > { %305 = vmatpush1.bf16.msra.mxu0 %v285_v20 }
  0x96   : > { %421 = vmatmul.mubr.msk.bf16.vlgmr.msra.gmra.mxu0 %vm168_vm1, %v271_v21 }
  0xd6   : > { %v263_v22 = vpop.f32.mrf.mxu1 }
  0xd8   : > { %v265_v23 = vpop.f32.mrf.mxu1 }
  0xda   : > { %v267_v24 = vpop.f32.mrf.mxu1 }
  0xdc   : > { %v268_v25 = vpop.f32.mrf.mxu1 }
 0x14e   : > { %v213_v26 = vpop.f32.mrf.mxu0 }
 0x14f   : > { %v264_v32 = vadd.f32 %v263_v22, %v213_v26 }
 0x150   : > { %v215_v28 = vpop.f32.mrf.mxu0 }
 0x152   : > { %v217_v29 = vpop.f32.mrf.mxu0 }
 0x154   : > { %v218_v31 = vpop.f32.mrf.mxu0 }
 0x156   : > { %v324_v33 = vpop.f32.mrf.mxu0 }
 0x157   : > { %v331_v34 = vadd.f32 %v324_v33, %v264_v32 }
 0x158   : > { %v326_v35 = vpop.f32.mrf.mxu0 }
 0x159   : > { %v338_v36 = vsel %vm336_vm4, %v331_v34, 0.0 }
 0x15a   : > { %v328_v37 = vpop.f32.mrf.mxu0  ;;  %341 = vadd.xlane.f32.xlu0 %v338_v36  ;;  %v343_v38 = vmul.f32 %v338_v36, %v338_v36 }
 0x15c   : > { %v329_v39 = vpop.f32.mrf.mxu0  ;;  %346 = vadd.xlane.f32.xlu1 %v343_v38 }
 0x1e3   : > { %v342_v40 = vpop.xlane.xlu0 %341 }
 0x1e5   : > { %v347_v41 = vpop.xlane.xlu1 %346 }
 0x1e6   : > { %v349_v42 = vsel %vm348_vm5, %v342_v40, %v347_v41 }
 0x1e7   : > { %351 = vst.msk [vmem:[%s141_s24] sm:$0xff] %vm350_vm6, %v349_v42 }
 0x1e8 PF: > { %s12_s9 = sadd.s32 1, %s448_s9  }
 0x1e9   : > { %p9_p4 = scmp.ge.s32.totalorder %s12_s9, 4  }
 0x1eb   :  { %11 = sbr.rel (!%p9_p4) target bundleno = 1 (0x1), region = 58 }

// kernel: conv_block.3
= control target key start
LH: loop header
LB: loop body
LE: loop exit
PB: predicated region body
PF: predicated region fallthrough
CT: control target
= control target key end

     0   :  { %10 = vsyncpa [#allocation3], 0  ;;  %s1013_s0 = inlined_call_operand.vmem [shape: bf16[8,24], index: 0, kind: input, shape index: {}]   ;;  %s1014_s1 = inlined_call_operand.vmem [shape: bf16[2,8,384], index: 1, kind: input, shape index: {}]   ;;  %s1015_s2 = inlined_call_operand.vmem [shape: f32[8,1], index: 2, kind: input, shape index: {}]   ;;  %s1016_s3 = inlined_call_operand.vmem [shape: f32[8,1], index: 3, kind: input, shape index: {}]   ;;  %s1017_s4 = inlined_call_operand.vmem [shape: f32[256,128], index: 4, kind: input, shape index: {}]   ;;  %s1018_s5 = inlined_call_operand.hbm [shape: f32[2,8,128], index: 5, kind: output, shape index: {}]  }
   0x1   :  { %12 = vsyncpa [#allocation3 + $0x1], 0  ;;  %s812_s18 = smov 0   ;;  %s814_s19 = smov 0  }
   0x2   :  { %s816_s20 = smov 0   ;;  %s818_s21 = smov 0  }
   0x3 LB: > { %s833_s22 = sadd.s32 4294967295, %s774_s21   ;;  %s608_s23 = sadd.s32 4294967294, %s774_s21   ;;  %s774_s21 = sphi %s818_s21, %s1024_s21   ;;  %s770_s20 = sphi %s816_s20, %s1023_s20   ;;  %s766_s19 = sphi %s814_s19, %s1022_s19   ;;  %s762_s18 = sphi %s812_s18, %s1021_s18  }
   0x4   : > { %s837_s24 = sadd.s32 1, %s774_s21   ;;  %s135_s25 = sadd.s32 1, %s770_s20 }
   0x5   : > { %s132_s26 = ssub.s32 %s774_s21, %s837_s24  ;;  %p145_p0 = scmp.ne.s32.totalorder %s770_s20, %s766_s19 }
   0x6   : > { %p133_p1 = scmp.eq.s32.totalorder %s132_s26, 0  ;;  %p146_p2 = scmp.eq.s32.totalorder %s833_s22, 1 }
   0x7   : > { %p151_p3 = scmp.ne.s32.totalorder %s766_s19, %s762_s18  ;;  %p152_p4 = scmp.eq.s32.totalorder %s608_s23, 1 }
   0x8   : > { %s848_s27 = scalar_select %p133_p1, %s770_s20, %s135_s25  }
   0x9   : > { %p850_p5 = por %p146_p2, %p145_p0  ;;  %p854_p6 = por %p152_p4, %p151_p3 }
   0xa   : > { %p611_p7 = scmp.ge.s32.totalorder %s774_s21, 1  ;;  %p190_p8 = scmp.lt.s32.totalorder %s774_s21, 3 }
   0xc   : > { %p191_p9 = pnand %p611_p7, %p190_p8 }
   0xd   : > { %p218_p10 = scmp.lt.s32.totalorder (!%p191_p9), %s833_s22, 1  ;;  %s777_s12 = smov (!%p191_p9), 127  }
   0xe   : > { %194 = sbr.rel (%p191_p9) target bundleno = 581 (0x245), region = 40  ;;  %s778_s13 = smov (!%p191_p9), 120  }
   0xf   : > { %s779_s14 = smov (!%p191_p9), 126   ;;  %s780_s15 = smov (!%p191_p9), 112  }
  0x10   : > { %s215_s26 = sand.u32 (!%p191_p9), 1, %s766_s19  }
  0x13   : > { %s219_s30 = scalar_select %p218_p10, %s833_s22, 1  ;;  %v776_v0 = vmov 0   ;;  %v224_v1 = vld [vmem:[%s1013_s0] sm:$0xf]  ;;  %v463_v9 = vld [vmem:[%s1017_s4 + $0xf8] sm:$0xff]  ;;  %v462_v11 = vld [vmem:[%s1017_s4 + $0xf0] sm:$0xff] }
  0x14   : > { %292 = vmatprep.mubr.bf16.mxu0 %v776_v0  ;;  %708 = vset.pattern.permute.xlu0 %v776_v0  ;;  %v614_v5 = vcombine.low %v224_v1, %v224_v1  ;;  %v414_v7 = vld [vmem:[%s1015_s2] sm:$0xff]  ;;  %v447_v10 = vld [vmem:[%s1017_s4 + $0x78] sm:$0xff]  ;;  %v446_v12 = vld [vmem:[%s1017_s4 + $0x70] sm:$0xff]  ;;  %vm246_vm0 = vcmask 1039360   ;;  %vm253_vm1 = vcmask 1043456   ;;  %vm249_vm2 = vcmask 64512  }
  0x15   : > { %s663_s6 = smul.u32 12, %s219_s30  ;;  %709 = vset.pattern.permute.xlu1 %v776_v0  ;;  %v422_v8 = vld [vmem:[%s1016_s3] sm:$0xff]  ;;  %628 = vmatprep.subr.mxu1 %v463_v9  ;;  %vm359_vm3 = vcmask 1031168   ;;  %v461_v28 = vld [vmem:[%s1017_s4 + $0xe8] sm:$0xff]  ;;  %v459_v32 = vld [vmem:[%s1017_s4 + $0xd8] sm:$0xff]  ;;  %s612_s30 = sshll.u32 %s215_s26, 3 }
  0x16   : > { %629 = vmatpush3.msra.mxu1 %v447_v10  ;;  %v445_v29 = vld [vmem:[%s1017_s4 + $0x68] sm:$0xff]  ;;  %v460_v30 = vld [vmem:[%s1017_s4 + $0xe0] sm:$0xff]  ;;  %v443_v33 = vld [vmem:[%s1017_s4 + $0x58] sm:$0xff]  ;;  %s217_s7 = scalar_lea.vmem [#allocation2], %s612_s30 }
  0x17   : > { %s222_s9 = scalar_lea.vmem %s1014_s1, %s663_s6  ;;  %630 = vmatprep.subr.mxu1 %v462_v11  ;;  %v444_v31 = vld [vmem:[%s1017_s4 + $0x60] sm:$0xff]  ;;  %v458_v34 = vld [vmem:[%s1017_s4 + $0xd0] sm:$0xff]  ;;  %v457_v36 = vld [vmem:[%s1017_s4 + $0xc8] sm:$0xff]  ;;  %s625_s6 = sshll.u32 %s833_s22, 7 }
  0x18   : > { %v225_v2 = vld [vmem:[%s222_s9] sm:$0xff]  ;;  %v711_v3 = vld [vmem:[%s222_s9 + $0x8] ss:$0 sps:$4 sm:$0xff]   ;;  %631 = vmatpush3.msra.mxu1 %v446_v12  ;;  %v442_v35 = vld [vmem:[%s1017_s4 + $0x50] sm:$0xff]  ;;  %s549_s8 = sshll.u32 %s217_s7, 4  ;;  %s547_s11 = scalar_lea.hbm %s1018_s5, %s625_s6  ;;  %s550_s8 = int_to_ptr.vmem [resolvable:$true] %s549_s8 }
  0x19   : > { %v615_v4 = vcombine.low %v225_v2, %v225_v2  ;;  %244 = vrot.lane.b32.xlu1 %v711_v3, %s777_s12  ;;  %v616_v6 = vcombine.high %v225_v2, %v225_v2  ;;  %632 = vmatprep.subr.mxu1 %v461_v28  ;;  %v441_v37 = vld [vmem:[%s1017_s4 + $0x48] sm:$0xff]  ;;  %v456_v38 = vld [vmem:[%s1017_s4 + $0xc0] sm:$0xff]  ;;  %v455_v40 = vld [vmem:[%s1017_s4 + $0xb8] sm:$0xff] }
  0x1a   : > { %633 = vmatpush3.msra.mxu1 %v445_v29  ;;  %v440_v39 = vld [vmem:[%s1017_s4 + $0x40] sm:$0xff]  ;;  %v439_v41 = vld [vmem:[%s1017_s4 + $0x38] sm:$0xff]  ;;  %v454_v42 = vld [vmem:[%s1017_s4 + $0xb0] sm:$0xff] }
  0x1b   : > { %240 = vrot.lane.b32.xlu0 %v615_v4, %s777_s12  ;;  %v305_v21 = vsel %vm253_vm1, %v615_v4, 0  ;;  %634 = vmatprep.subr.mxu1 %v460_v30  ;;  %v438_v43 = vld [vmem:[%s1017_s4 + $0x30] sm:$0xff]  ;;  %v453_v44 = vld [vmem:[%s1017_s4 + $0xa8] sm:$0xff]  ;;  %v452_v46 = vld [vmem:[%s1017_s4 + $0xa0] sm:$0xff] }
  0x1c   : > { %635 = vmatpush3.msra.mxu1 %v444_v31  ;;  %v437_v45 = vld [vmem:[%s1017_s4 + $0x28] sm:$0xff]  ;;  %v436_v47 = vld [vmem:[%s1017_s4 + $0x20] sm:$0xff]  ;;  %v451_v48 = vld [vmem:[%s1017_s4 + $0x98] sm:$0xff] }
  0x1d   : > { %230 = vrot.lane.b32.xlu1 %v614_v5, %s778_s13  ;;  %636 = vmatprep.subr.mxu1 %v459_v32  ;;  %v435_v49 = vld [vmem:[%s1017_s4 + $0x18] sm:$0xff]  ;;  %v450_v50 = vld [vmem:[%s1017_s4 + $0x90] sm:$0xff]  ;;  %v449_v52 = vld [vmem:[%s1017_s4 + $0x88] sm:$0xff]  ;;  %s714_s13 = scalar_lea.vmem %s550_s8, 128 }
  0x1e   : > { %637 = vmatpush3.msra.mxu1 %v443_v33  ;;  %v434_v51 = vld [vmem:[%s1017_s4 + $0x10] sm:$0xff]  ;;  %v433_v53 = vld [vmem:[%s1017_s4 + $0x8] sm:$0xff]  ;;  %v448_v54 = vld [vmem:[%s1017_s4 + $0x80] sm:$0xff]  ;;  %p715_p11 = scmp.ne.s32.totalorder %s550_s8, %s714_s13 }
  0x1f   : > { %242 = vrot.lane.b32.xlu0 %v616_v6, %s777_s12  ;;  %638 = vmatprep.subr.mxu1 %v458_v34  ;;  %v432_v55 = vld [vmem:[%s1017_s4] sm:$0xff]  ;;  %s536_s12 = scalar_lea.sflag [#allocation3], %s215_s26 }
  0x20   : > { %639 = vmatpush3.msra.mxu1 %v442_v35  ;;  %p716_p12 = pnand %p715_p11, %p850_p5 }
  0x21   : > { %355 = vrot.lane.b32.xlu1 %v616_v6, %s779_s14  ;;  %640 = vmatprep.subr.mxu1 %v457_v36 }
  0x22   : > { %641 = vmatpush3.msra.mxu1 %v441_v37  ;;  %p717_p13 = pneg %p716_p12 }
  0x23   : > { %353 = vrot.lane.b32.xlu0 %v615_v4, %s779_s14  ;;  %642 = vmatprep.subr.mxu1 %v456_v38 }
  0x24   : > { %643 = vmatpush3.msra.mxu1 %v440_v39 }
  0x25   : > { %351 = vrot.lane.b32.xlu1 %v614_v5, %s780_s15  ;;  %644 = vmatprep.subr.mxu1 %v455_v40 }
  0x26   : > { %645 = vmatpush3.msra.mxu1 %v439_v41 }
  0x27   : > { %357 = vrot.lane.b32.xlu0 %v711_v3, %s779_s14  ;;  %646 = vmatprep.subr.mxu1 %v454_v42  ;;  %s781_s14 = smov [#allocation2]  }
  0x28   : > { %647 = vmatpush3.msra.mxu1 %v438_v43  ;;  %s718_s15 = sshll.u32 %s781_s14, 4  ;;  %s719_s15 = int_to_ptr.vmem [resolvable:$false] %s718_s15 }
  0x29   : > { %425 = vperm.xlu1 %709, %v422_v8   ;;  %648 = vmatprep.subr.mxu1 %v453_v44  ;;  %s720_s22 = scalar_lea.vmem %s719_s15, 256  ;;  %p721_p0 = scmp.lt.s32.totalorder %s550_s8, %s719_s15 }
  0x2a   : > { %649 = vmatpush3.msra.mxu1 %v437_v45  ;;  %p722_p1 = scmp.lt.s32.totalorder %s720_s22, %s714_s13 }
  0x2b   : > { %417 = vperm.xlu0 %708, %v414_v7   ;;  %650 = vmatprep.subr.mxu1 %v452_v46 }
  0x2c   : > { %651 = vmatpush3.msra.mxu1 %v436_v47  ;;  %p723_p2 = por %p722_p1, %p721_p0 }
  0x2d   : > { %652 = vmatprep.subr.mxu1 %v451_v48 }
  0x2e   : > { %653 = vmatpush3.msra.mxu1 %v435_v49  ;;  %p724_p3 = pnand %p723_p2, %p717_p13 }
  0x2f   : > { %654 = vmatprep.subr.mxu1 %v450_v50 }
  0x30   : > { %655 = vmatpush3.msra.mxu1 %v434_v51 }
  0x31   : > { %656 = vmatprep.subr.mxu1 %v449_v52 }
  0x32   : > { %657 = vmatpush3.msra.mxu1 %v433_v53 }
  0x33   : > { %658 = vmatprep.subr.mxu1 %v448_v54 }
  0x34   : > { %659 = vmatpush3.msra.mxu1 %v432_v55 }
  0x8b   : > { %v245_v14 = vpop.permute.xlu1 %244 }
  0x8d   : > { %v241_v13 = vpop.permute.xlu0 %240 }
  0x8f   : > { %v231_v19 = vpop.permute.xlu1 %230 }
  0x91   : > { %v243_v15 = vpop.permute.xlu0 %242 }
  0x92   : > { %v248_v16 = vsel %vm246_vm0, %v243_v15, %v245_v14  ;;  %v247_v17 = vsel %vm246_vm0, %v241_v13, %v243_v15 }
  0x93   : > { %618 = vmatprep.subr.msk.bf16.mxu0 %vm253_vm1, %v248_v16  ;;  %v255_v18 = vsel %vm253_vm1, %v247_v17, 0  ;;  %v356_v22 = vpop.permute.xlu1 %355 }
  0x94   : > { %275 = vmatpush1.bf16.msra.mxu0 %v255_v18 }
  0x95   : > { %620 = vmatprep.subr.msk.bf16.mxu0 %vm253_vm1, %v616_v6  ;;  %v354_v20 = vpop.permute.xlu0 %353 }
  0x96   : > { %v360_v24 = vsel %vm359_vm3, %v354_v20, %v356_v22 }
  0x97   : > { %619 = vmatmul.mubr.msk.bf16.vlgmr.msra.gmra.mxu0 %vm249_vm2, %v231_v19  ;;  %v366_v26 = vsel %vm253_vm1, %v360_v24, 0  ;;  %v352_v27 = vpop.permute.xlu1 %351 }
  0x98   : > { %325 = vmatpush1.bf16.msra.mxu0 %v305_v21  ;;  %342 = vmatprep.mubr.bf16.mxu0 %v776_v0 }
  0x99   : > { %v358_v23 = vpop.permute.xlu0 %357 }
  0x9a   : > { %v361_v25 = vsel %vm359_vm3, %v356_v22, %v358_v23 }
  0x9b   : > { %622 = vmatprep.subr.msk.bf16.mxu0 %vm253_vm1, %v361_v25 }
  0x9f   : > { %621 = vmatmul.mubr.msk.bf16.vlgmr.msra.gmra.mxu0 %vm249_vm2, %v224_v1 }
  0xa0   : > { %386 = vmatpush1.bf16.msra.mxu0 %v366_v26  ;;  %403 = vmatprep.mubr.bf16.mxu0 %v776_v0 }
  0xa4   : > { %v426_v8 = vpop.permute.xlu1 %425 }
  0xa6   : > { %v418_v2 = vpop.permute.xlu0 %417 }
  0xa7   : > { %623 = vmatmul.mubr.msk.bf16.vlgmr.msra.gmra.mxu0 %vm249_vm2, %v352_v27 }
 0x157   : > { %v294_v56 = vpop.f32.mrf.mxu0 }
 0x159   : > { %v296_v57 = vpop.f32.mrf.mxu0 }
 0x15b   : > { %v298_v58 = vpop.f32.mrf.mxu0 }
 0x15d   : > { %v299_v59 = vpop.f32.mrf.mxu0 }
 0x15f   : > { %v344_v60 = vpop.f32.mrf.mxu0 }
 0x160   : > { %v345_v0 = vadd.f32 %v344_v60, %v294_v56 }
 0x161   : > { %v346_v61 = vpop.f32.mrf.mxu0 }
 0x162   : > { %v347_v3 = vadd.f32 %v346_v61, %v296_v57 }
 0x163   : > { %v348_v62 = vpop.f32.mrf.mxu0 }
 0x165   : > { %v349_v63 = vpop.f32.mrf.mxu0 }
 0x167   : > { %v405_v1 = vpop.f32.mrf.mxu0 }
 0x168   : > { %v412_v4 = vadd.f32 %v405_v1, %v345_v0 }
 0x169   : > { %v407_v5 = vpop.f32.mrf.mxu0 }
 0x16a   : > { %v420_v6 = vmul.f32 %v418_v2, %v412_v4  ;;  %v413_v7 = vadd.f32 %v407_v5, %v347_v3 }
 0x16b   : > { %v409_v9 = vpop.f32.mrf.mxu0 }
 0x16c   : > { %v421_v10 = vmul.f32 %v418_v2, %v413_v7  ;;  %v428_v11 = vadd.f32 %v426_v8, %v420_v6 }
 0x16d   : > { %v410_v12 = vpop.f32.mrf.mxu0 }
 0x16e   : > { %v429_v13 = vadd.f32 %v426_v8, %v421_v10  ;;  %v430_v15 = vmax.f32 %v428_v11, 0.0 }
 0x170   : > { %v431_v14 = vmax.f32 %v429_v13, 0.0 }
 0x172   : > { %528 = vmatprep.mubr.f32.mxu1 %v431_v14 }
 0x173   : > { %529 = vmatmul.mubr.f32.vlgmr.msra.gmra.mxu1 %v430_v15 }
 0x233   : > { %v660_v16 = vpop.f32.mrf.mxu1 }
 0x235   : > { %v661_v17 = vpop.f32.mrf.mxu1 }
 0x236   : > { %v662_v18 = vadd.f32 %v661_v17, %v660_v16 }
 0x238   : > { %534 = vst [vmem:[%s217_s7] sm:$0xff] %v662_v18 }
 0x239   : > { %727 = shalt.err (!%p724_p3)
}
 0x23a   : > { %s728_s16 = scalar_lea.hbm %s547_s11, 128  ;;  %s732_s25 = scalar_lea.hbm %s1018_s5, 256 }
 0x23b   : > { %p729_p4 = scmp.ne.s32.totalorder %s547_s11, %s728_s16  ;;  %p733_p9 = scmp.lt.s32.totalorder %s547_s11, %s1018_s5 }
 0x23c   : > { %p734_p10 = scmp.lt.s32.totalorder %s732_s25, %s728_s16 }
 0x23d   : > { %p730_p7 = pnand %p729_p4, %p850_p5 }
 0x23e   : > { %p735_p11 = por %p734_p10, %p733_p9 }
 0x23f   : > { %p731_p8 = pneg %p730_p7 }
 0x241   : > { %p736_p12 = pnand %p735_p11, %p731_p8 }
 0x243   : > { %739 = shalt.err (!%p736_p12)
}
 0x244   : > { %664 = dma.vmem_to_hbm [thread:$0]  (%p850_p5), %s550_s8, 128, %s547_s11, %s536_s12  }
 0x245 PF: > { %p670_p13 = scmp.ge.s32.totalorder %s774_s21, 2  ;;  %s561_s6 = sand.u32 1, %s762_s18  }
 0x246   : > { %s562_s7 = scalar_lea.sflag [#allocation3], %s561_s6 }
 0x247   : > { %p667_p0 = pnand %p670_p13, %p854_p6 }
 0x249   : > { %p668_p1 = pneg %p667_p0 }
 0x24b   : > { %757 = dma.done.wait (%p668_p1), %s562_s7, 128  }
 0x24c   : > { %759 = vsyncadd (%p668_p1), %s562_s7, 4294967168  ;;  %p15_p2 = scmp.ge.s32.totalorder %s837_s24, 4   ;;  %s1021_s18 = smov %s766_s19 }
 0x24d   : > { %s1022_s19 = smov %s770_s20  ;;  %s1023_s20 = smov %s848_s27 }
 0x24e   : > { %s1024_s21 = smov %s837_s24  ;;  %17 = sbr.rel (!%p15_p2) target bundleno = 3 (0x3), region = 75 }
 0x253   :  { %567 = vsyncpa [#allocation3], 1 }
 0x254   :  { %569 = vsyncpa [#allocation3 + $0x1], 1 }

</bundles_post_ra>
